<compile_context>
chip_gen: v6e
topology: v6e:2x2x1
jax: 0.10.0
libtpu: 0.0.40
codegen_flags: <defaults>
</compile_context>

<pallas_src>
import jax
import jax.numpy as jnp
from jax import lax
from jax.experimental import pallas as pl
from jax.experimental.pallas import tpu as pltpu


def _round_up(x, m):
    return (x + m - 1) // m * m


def _tile_sizes(m, k, n):
    # MXU-aligned tiles, sized so double-buffered input tiles + the f32
    # accumulator stay well under the scoped-VMEM limit on every generation
    # (worst case ~9 MiB << 32 MiB; v7x physical VMEM is 64 MiB).
    tm = min(256, _round_up(m, 8))
    tk = min(1024, _round_up(k, 128))
    tn = min(512, _round_up(n, 128))
    return tm, tk, tn


# ---------------------------------------------------------------------------
# Fast path: the whole contraction dim fits in one K tile -> 2-D grid,
# no accumulator scratch, no pl.when branches.
# ---------------------------------------------------------------------------
def _linear_bias_single_k_kernel(x_ref, w_ref, b_ref, o_ref):
    acc = lax.dot_general(
        x_ref[...],
        w_ref[...],
        dimension_numbers=(((1,), (1,)), ((), ())),
        preferred_element_type=jnp.float32,
    )
    o_ref[...] = (acc + b_ref[...]).astype(o_ref.dtype)


def _linear_nobias_single_k_kernel(x_ref, w_ref, o_ref):
    acc = lax.dot_general(
        x_ref[...],
        w_ref[...],
        dimension_numbers=(((1,), (1,)), ((), ())),
        preferred_element_type=jnp.float32,
    )
    o_ref[...] = acc.astype(o_ref.dtype)


# ---------------------------------------------------------------------------
# General path: K is tiled -> 3-D grid with f32 VMEM accumulator.
# ---------------------------------------------------------------------------
def _linear_bias_kernel(x_ref, w_ref, b_ref, o_ref, acc_ref):
    k = pl.program_id(2)

    @pl.when(k == 0)
    def _():
        acc_ref[...] = jnp.zeros_like(acc_ref)

    acc_ref[...] += lax.dot_general(
        x_ref[...],
        w_ref[...],
        dimension_numbers=(((1,), (1,)), ((), ())),
        preferred_element_type=jnp.float32,
    )

    @pl.when(k == pl.num_programs(2) - 1)
    def _():
        # Bias add fused into the finalize pass (f32 accumulator + f32 bias).
        o_ref[...] = (acc_ref[...] + b_ref[...]).astype(o_ref.dtype)


def _linear_nobias_kernel(x_ref, w_ref, o_ref, acc_ref):
    k = pl.program_id(2)

    @pl.when(k == 0)
    def _():
        acc_ref[...] = jnp.zeros_like(acc_ref)

    acc_ref[...] += lax.dot_general(
        x_ref[...],
        w_ref[...],
        dimension_numbers=(((1,), (1,)), ((), ())),
        preferred_element_type=jnp.float32,
    )

    @pl.when(k == pl.num_programs(2) - 1)
    def _():
        o_ref[...] = acc_ref[...].astype(o_ref.dtype)


@jax.jit
def _linear_norm_2d(x2d, weight, bias):
    """x2d: [M, in_dim], weight: [out_dim, in_dim] (PyTorch layout),
    bias: f32 [out_dim] or None. Returns [M, out_dim] in x2d.dtype."""
    m, in_dim = x2d.shape
    out_dim = weight.shape[0]
    dtype = x2d.dtype

    tm, tk, tn = _tile_sizes(m, in_dim, out_dim)
    m_p = _round_up(m, tm)
    k_p = _round_up(in_dim, tk)
    n_p = _round_up(out_dim, tn)

    # Zero padding is exact for a matmul; gives lane-dense, 8/128-aligned tiles.
    x_p = jnp.pad(x2d, ((0, m_p - m), (0, k_p - in_dim)))
    w_p = jnp.pad(weight.astype(dtype), ((0, n_p - out_dim), (0, k_p - in_dim)))

    n_k = k_p // tk
    dtype_bytes = jnp.dtype(dtype).itemsize
    cost = pl.CostEstimate(
        flops=2 * m_p * k_p * n_p,
        transcendentals=0,
        bytes_accessed=(m_p * k_p + n_p * k_p + m_p * n_p) * dtype_bytes,
    )

    has_bias = bias is not None
    if has_bias:
        # Bias kept in f32 (never rounded to a narrower activation dtype).
        b_p = jnp.pad(bias.astype(jnp.float32), (0, n_p - out_dim)).reshape(1, n_p)

    if n_k == 1:
        # --- Fast path: single K tile, 2-D (M, N) grid, fully parallel. ---
        grid = (m_p // tm, n_p // tn)
        x_spec = pl.BlockSpec((tm, k_p), lambda i, j: (i, 0))
        w_spec = pl.BlockSpec((tn, k_p), lambda i, j: (j, 0))
        o_spec = pl.BlockSpec((tm, tn), lambda i, j: (i, j))
        compiler_params = pltpu.CompilerParams(
            dimension_semantics=("parallel", "parallel"),
            vmem_limit_bytes=32 * 1024 * 1024,
        )
        if has_bias:
            b_spec = pl.BlockSpec((1, tn), lambda i, j: (0, j))
            out = pl.pallas_call(
                _linear_bias_single_k_kernel,
                out_shape=jax.ShapeDtypeStruct((m_p, n_p), dtype),
                grid_spec=pltpu.PrefetchScalarGridSpec(
                    num_scalar_prefetch=0,
                    grid=grid,
                    in_specs=[x_spec, w_spec, b_spec],
                    out_specs=o_spec,
                ),
                compiler_params=compiler_params,
                cost_estimate=cost,
            )(x_p, w_p, b_p)
        else:
            out = pl.pallas_call(
                _linear_nobias_single_k_kernel,
                out_shape=jax.ShapeDtypeStruct((m_p, n_p), dtype),
                grid_spec=pltpu.PrefetchScalarGridSpec(
                    num_scalar_prefetch=0,
                    grid=grid,
                    in_specs=[x_spec, w_spec],
                    out_specs=o_spec,
                ),
                compiler_params=compiler_params,
                cost_estimate=cost,
            )(x_p, w_p)
    else:
        # --- General path: tiled K reduction with f32 accumulator. ---
        grid = (m_p // tm, n_p // tn, n_k)
        x_spec = pl.BlockSpec((tm, tk), lambda i, j, k: (i, k))
        w_spec = pl.BlockSpec((tn, tk), lambda i, j, k: (j, k))
        o_spec = pl.BlockSpec((tm, tn), lambda i, j, k: (i, j))
        scratch = [pltpu.VMEM((tm, tn), jnp.float32)]
        compiler_params = pltpu.CompilerParams(
            dimension_semantics=("parallel", "parallel", "arbitrary"),
            vmem_limit_bytes=32 * 1024 * 1024,
        )
        if has_bias:
            b_spec = pl.BlockSpec((1, tn), lambda i, j, k: (0, j))
            out = pl.pallas_call(
                _linear_bias_kernel,
                out_shape=jax.ShapeDtypeStruct((m_p, n_p), dtype),
                grid_spec=pltpu.PrefetchScalarGridSpec(
                    num_scalar_prefetch=0,
                    grid=grid,
                    in_specs=[x_spec, w_spec, b_spec],
                    out_specs=o_spec,
                    scratch_shapes=scratch,
                ),
                compiler_params=compiler_params,
                cost_estimate=cost,
            )(x_p, w_p, b_p)
        else:
            out = pl.pallas_call(
                _linear_nobias_kernel,
                out_shape=jax.ShapeDtypeStruct((m_p, n_p), dtype),
                grid_spec=pltpu.PrefetchScalarGridSpec(
                    num_scalar_prefetch=0,
                    grid=grid,
                    in_specs=[x_spec, w_spec],
                    out_specs=o_spec,
                    scratch_shapes=scratch,
                ),
                compiler_params=compiler_params,
                cost_estimate=cost,
            )(x_p, w_p)

    return out[:m, :out_dim]


def linear_norm(x, weight, bias=None):
    """Equivalent of torch.nn.Linear(in_dim, out_dim)(x).

    x:      [..., in_dim]
    weight: [out_dim, in_dim]   (PyTorch convention, no transpose needed)
    bias:   [out_dim] or None
    returns [..., out_dim]
    """
    in_dim = x.shape[-1]
    out_dim = weight.shape[0]
    lead_shape = x.shape[:-1]
    x2d = x.reshape(-1, in_dim)
    out2d = _linear_norm_2d(x2d, weight, bias)
    return out2d.reshape(*lead_shape, out_dim)


if __name__ == "__main__":
    # Small shapes consistent with the module: batch=2, seq=8, hidden in/out.
    batch, seq, in_dim, out_dim = 2, 8, 32, 64

    key = jax.random.PRNGKey(0)
    kx, kw, kb = jax.random.split(key, 3)

    x = jax.random.normal(kx, (batch, seq, in_dim), dtype=jnp.float32)

    # Parameter init mimicking torch.nn.Linear's U(-1/sqrt(in_dim), 1/sqrt(in_dim)).
    bound = 1.0 / (in_dim ** 0.5)
    weight = jax.random.uniform(
        kw, (out_dim, in_dim), minval=-bound, maxval=bound, dtype=jnp.float32
    )
    bias = jax.random.uniform(
        kb, (out_dim,), minval=-bound, maxval=bound, dtype=jnp.float32
    )

    # With bias.
    y = linear_norm(x, weight, bias)
    jax.block_until_ready(y)
    y_ref = x @ weight.T + bias
    assert y.shape == (batch, seq, out_dim)
    assert jnp.allclose(y, y_ref, atol=1e-5, rtol=1e-5)

    # Without bias (bias=False path of the module).
    y_nb = linear_norm(x, weight, None)
    jax.block_until_ready(y_nb)
    y_nb_ref = x @ weight.T
    assert jnp.allclose(y_nb, y_nb_ref, atol=1e-5, rtol=1e-5)

    # A larger shape that exercises the tiled-K accumulator path.
    in2, out2 = 2048, 384
    x2 = jax.random.normal(kx, (batch, seq, in2), dtype=jnp.float32)
    w2 = jax.random.normal(kw, (out2, in2), dtype=jnp.float32) * 0.02
    b2 = jax.random.normal(kb, (out2,), dtype=jnp.float32) * 0.02
    y2 = linear_norm(x2, w2, b2)
    jax.block_until_ready(y2)
    y2_ref = x2 @ w2.T + b2
    assert jnp.allclose(y2, y2_ref, atol=1e-4, rtol=1e-4)

    print("KERNEL_OK")
</pallas_src>

<mosaic_0001>
module attributes {stable_mosaic.version = 11 : i64} {
  func.func @_linear_bias_single_k_kernel(%arg0: i32, %arg1: i32, %arg2: memref<16x128xf32, #tpu.memory_space<vmem>>, %arg3: memref<128x128xf32, #tpu.memory_space<vmem>>, %arg4: memref<1x128xf32, #tpu.memory_space<vmem>>, %arg5: memref<16x128xf32, #tpu.memory_space<vmem>>) attributes {dimension_semantics = [#tpu.dimension_semantics<parallel>, #tpu.dimension_semantics<parallel>], iteration_bounds = array<i64: 1, 1>, scalar_prefetch = 0 : i64, scratch_operands = 0 : i64, tpu.core_type = #tpu.core_type<tc>, window_params = [{transform_indices = @transform_0, window_bounds = array<i64: 16, 128>}, {transform_indices = @transform_1, window_bounds = array<i64: 128, 128>}, {transform_indices = @transform_2, window_bounds = array<i64: 1, 128>}, {transform_indices = @transform_3, window_bounds = array<i64: 16, 128>}]} {
    %c0 = arith.constant 0 : index
    %c0_0 = arith.constant 0 : index
    %0 = vector.load %arg2[%c0, %c0_0] : memref<16x128xf32, #tpu.memory_space<vmem>>, vector<16x128xf32>
    %c0_1 = arith.constant 0 : index
    %c0_2 = arith.constant 0 : index
    %1 = vector.load %arg3[%c0_1, %c0_2] : memref<128x128xf32, #tpu.memory_space<vmem>>, vector<128x128xf32>
    %cst = arith.constant dense<0.000000e+00> : vector<16x128xf32>
    %2 = tpu.matmul %0, %1, %cst {dimension_numbers = #tpu.dot_dimension_numbers<[1], [1], [0], [0], [0, 0, 1, 0], [], []>} : vector<16x128xf32>, vector<128x128xf32>, vector<16x128xf32> -> vector<16x128xf32>
    %c0_3 = arith.constant 0 : index
    %c0_4 = arith.constant 0 : index
    %3 = vector.load %arg4[%c0_3, %c0_4] : memref<1x128xf32, #tpu.memory_space<vmem>>, vector<1x128xf32>
    %4 = vector.broadcast %3 : vector<1x128xf32> to vector<16x128xf32>
    %5 = arith.addf %2, %4 : vector<16x128xf32>
    %c0_5 = arith.constant 0 : index
    %c0_6 = arith.constant 0 : index
    %6 = vector.load %arg5[%c0_5, %c0_6] : memref<16x128xf32, #tpu.memory_space<vmem>>, vector<16x128xf32>
    tpu.vector_store %arg5[%c0_5, %c0_6], %5 {strides = array<i32>} : memref<16x128xf32, #tpu.memory_space<vmem>>, vector<16x128xf32>,
    return
  }
  func.func @transform_0(%arg0: i32, %arg1: i32) -> (i32, i32) {
    %c0_i32 = arith.constant 0 : i32
    %c0_i32_0 = arith.constant 0 : i32
    return %arg0, %c0_i32 : i32, i32
  }
  func.func @transform_1(%arg0: i32, %arg1: i32) -> (i32, i32) {
    %c0_i32 = arith.constant 0 : i32
    %c0_i32_0 = arith.constant 0 : i32
    return %arg1, %c0_i32 : i32, i32
  }
  func.func @transform_2(%arg0: i32, %arg1: i32) -> (i32, i32) {
    %c0_i32 = arith.constant 0 : i32
    %c0_i32_0 = arith.constant 0 : i32
    return %c0_i32, %arg1 : i32, i32
  }
  func.func @transform_3(%arg0: i32, %arg1: i32) -> (i32, i32) {
    %c0_i32 = arith.constant 0 : i32
    return %arg0, %arg1 : i32, i32
  }
}

</mosaic_0001>

<bundles_post_ra>
// kernel: _linear_norm_2d.1
= control target key start
LH: loop header
LB: loop body
LE: loop exit
PB: predicated region body
PF: predicated region fallthrough
CT: control target
= control target key end

     0   :  { %s295_s0 = inlined_call_operand.vmem [shape: f32[16,128], index: 0, kind: input, shape index: {}]   ;;  %s296_s1 = inlined_call_operand.vmem [shape: f32[128,128], index: 1, kind: input, shape index: {}]   ;;  %s297_s2 = inlined_call_operand.vmem [shape: f32[1,128], index: 2, kind: input, shape index: {}]   ;;  %s298_s3 = inlined_call_operand.hbm [shape: f32[16,128], index: 3, kind: output, shape index: {}]  }
   0x1   :  { %v32_v0 = vld [vmem:[%s296_s1 + $0x78] sm:$0xff]  ;;  %v31_v1 = vld [vmem:[%s296_s1 + $0x70] sm:$0xff]  ;;  %v30_v2 = vld [vmem:[%s296_s1 + $0x68] sm:$0xff] }
   0x2   :  { %152 = vmatprep.subr.mxu0 %v32_v0  ;;  %v15_v3 = vld [vmem:[%s295_s0] sm:$0xff] }
   0x3   :  { %153 = vmatpush3.xpose.msra.mxu0 %v32_v0  ;;  %184 = vmatprep.mubr.f32.mxu0 %v15_v3 }
   0x4   :  { %154 = vmatprep.subr.mxu0 %v31_v1 }
   0x7   :  { %155 = vmatpush3.xpose.msra.mxu0 %v31_v1 }
   0x8   :  { %8 = vsyncpa [#allocation3], 0  ;;  %156 = vmatprep.subr.mxu0 %v30_v2  ;;  %v29_v4 = vld [vmem:[%s296_s1 + $0x60] sm:$0xff]  ;;  %v28_v5 = vld [vmem:[%s296_s1 + $0x58] sm:$0xff]  ;;  %s212_s23 = smov [#allocation2]  }
   0x9   :  { %v27_v6 = vld [vmem:[%s296_s1 + $0x50] sm:$0xff]  ;;  %v26_v7 = vld [vmem:[%s296_s1 + $0x48] sm:$0xff]  ;;  %v25_v8 = vld [vmem:[%s296_s1 + $0x40] sm:$0xff]  ;;  %s122_s24 = sshll.u32 %s212_s23, 4  ;;  %s123_s24 = int_to_ptr.vmem [resolvable:$true] %s122_s24 }
   0xa   :  { %v24_v9 = vld [vmem:[%s296_s1 + $0x38] sm:$0xff]  ;;  %v23_v10 = vld [vmem:[%s296_s1 + $0x30] sm:$0xff]  ;;  %v22_v11 = vld [vmem:[%s296_s1 + $0x28] sm:$0xff]  ;;  %p195_p1 = scmp.lt.s32.totalorder %s123_s24, %s123_s24 }
   0xb   :  { %157 = vmatpush3.xpose.msra.mxu0 %v30_v2  ;;  %v21_v12 = vld [vmem:[%s296_s1 + $0x20] sm:$0xff]  ;;  %v20_v13 = vld [vmem:[%s296_s1 + $0x18] sm:$0xff]  ;;  %v19_v14 = vld [vmem:[%s296_s1 + $0x10] sm:$0xff] }
   0xc   :  { %158 = vmatprep.subr.mxu0 %v29_v4  ;;  %v18_v15 = vld [vmem:[%s296_s1 + $0x8] sm:$0xff]  ;;  %v17_v16 = vld [vmem:[%s296_s1] sm:$0xff]  ;;  %s190_s1 = scalar_lea.vmem %s123_s24, 256 }
   0xd   :  { %v16_v17 = vld [vmem:[%s295_s0 + $0x8] sm:$0xff]  ;;  %v133_v18 = vld [vmem:[%s297_s2] ss:$0 sm:$0xff]  ;;  %p191_p0 = scmp.ne.s32.totalorder %s123_s24, %s190_s1  ;;  %p196_p2 = scmp.lt.s32.totalorder %s190_s1, %s190_s1 }
   0xf   :  { %159 = vmatpush3.xpose.msra.mxu0 %v29_v4  ;;  %p197_p3 = por %p196_p2, %p195_p1 }
  0x10   :  { %160 = vmatprep.subr.mxu0 %v28_v5 }
  0x11   :  { %p198_p4 = pnand %p197_p3, %p191_p0 }
  0x13   :  { %161 = vmatpush3.xpose.msra.mxu0 %v28_v5 }
  0x14   :  { %162 = vmatprep.subr.mxu0 %v27_v6 }
  0x17   :  { %163 = vmatpush3.xpose.msra.mxu0 %v27_v6 }
  0x18   :  { %164 = vmatprep.subr.mxu0 %v26_v7 }
  0x1b   :  { %165 = vmatpush3.xpose.msra.mxu0 %v26_v7 }
  0x1c   :  { %166 = vmatprep.subr.mxu0 %v25_v8 }
  0x1f   :  { %167 = vmatpush3.xpose.msra.mxu0 %v25_v8 }
  0x20   :  { %168 = vmatprep.subr.mxu0 %v24_v9 }
  0x23   :  { %169 = vmatpush3.xpose.msra.mxu0 %v24_v9 }
  0x24   :  { %170 = vmatprep.subr.mxu0 %v23_v10 }
  0x27   :  { %171 = vmatpush3.xpose.msra.mxu0 %v23_v10 }
  0x28   :  { %172 = vmatprep.subr.mxu0 %v22_v11 }
  0x2b   :  { %173 = vmatpush3.xpose.msra.mxu0 %v22_v11 }
  0x2c   :  { %174 = vmatprep.subr.mxu0 %v21_v12 }
  0x2f   :  { %175 = vmatpush3.xpose.msra.mxu0 %v21_v12 }
  0x30   :  { %176 = vmatprep.subr.mxu0 %v20_v13 }
  0x33   :  { %177 = vmatpush3.xpose.msra.mxu0 %v20_v13 }
  0x34   :  { %178 = vmatprep.subr.mxu0 %v19_v14 }
  0x37   :  { %179 = vmatpush3.xpose.msra.mxu0 %v19_v14 }
  0x38   :  { %180 = vmatprep.subr.mxu0 %v18_v15 }
  0x3b   :  { %181 = vmatpush3.xpose.msra.mxu0 %v18_v15 }
  0x3c   :  { %182 = vmatprep.subr.mxu0 %v17_v16 }
  0x3f   :  { %183 = vmatpush3.xpose.msra.mxu0 %v17_v16 }
  0x42   :  { %185 = vmatmul.mubr.f32.vlgmr.msra.gmra.mxu0 %v16_v17 }
 0x102   :  { %v186_v19 = vpop.f32.mrf.mxu0 }
 0x103   :  { %v112_v20 = vadd.f32 %v186_v19, %v133_v18 }
 0x104   :  { %v106_v21 = vpop.f32.mrf.mxu0 }
 0x105   :  { %116 = vst [vmem:[#allocation2 + $0x8] sm:$0xff] %v112_v20  ;;  %v107_v22 = vadd.f32 %v133_v18, %v106_v21 }
 0x107   :  { %115 = vst [vmem:[#allocation2] sm:$0xff] %v107_v22 }
 0x108   :  { %201 = shalt.err (!%p198_p4)
}
 0x109   :  { %s213_s0 = smov 128   ;;  %s214_s25 = smov 8  }
 0x10a   :  { %128 = dma.vmem_to_hbm [thread:$0]  %s123_s24, 256, %s298_s3, [#allocation3], %s213_s0, %s213_s0, %s214_s25  }
 0x10b   :  { %210 = dma.done.wait [#allocation3], 256  }
 0x10c   :  { %211 = vsyncadd [#allocation3], 4294967040 }
 0x10d   :  { %132 = vsyncpa [#allocation3], 1 }

</bundles_post_ra>
